<compile_context>
chip_gen: v7x
topology: tpu7x:2x2x1
jax: 0.10.0
libtpu: 0.0.40
codegen_flags: <defaults>
</compile_context>

<pallas_src>
import jax
import jax.numpy as jnp
from jax.experimental import pallas as pl
from jax.experimental.pallas import tpu as pltpu


# Packed parameter slab layout (every section starts on an 8-sublane boundary):
#   rows 0..2        : W1   (3, H)   first linear, stored (in_features, out_features)
#   rows 3..7        : zero padding
#   row  8           : b1   (H,)
#   row  9           : b2   (H,)
#   row  10          : W3^T (H,)     last linear's weight stored as a row
#   row  11, col 0   : b3   scalar
#   rows 12..15      : zero padding
#   rows 16..16+H-1  : W2   (H, H)
_HDR_ROWS = 16


def actor_kernel(x_ref, p_ref, o_ref):
    H = p_ref.shape[1]

    x = x_ref[...]                                  # (B, 3)
    hdr = p_ref[0:_HDR_ROWS, :]                     # (16, H) header, one aligned load
    w1r0 = hdr[0:1, :]                              # (1, H)
    w1r1 = hdr[1:2, :]
    w1r2 = hdr[2:3, :]
    b1 = hdr[8:9, :]
    b2 = hdr[9:10, :]
    w3t = hdr[10:11, :]
    b3 = hdr[11:12, 0:1]                            # (1, 1)
    w2 = p_ref[_HDR_ROWS:_HDR_ROWS + H, :]          # (H, H), 8-row aligned slice

    # Layer 1 (K=3): three VPU mul-adds instead of a 97%-padded MXU pass.
    h1 = jnp.tanh(x[:, 0:1] * w1r0 + x[:, 1:2] * w1r1 + x[:, 2:3] * w1r2 + b1)

    # Layer 2 (H x H): the only MXU matmul.
    h2 = jnp.tanh(jnp.dot(h1, w2, preferred_element_type=jnp.float32) + b2)

    # Layer 3 (N=1): broadcast-multiply + lane (XLU) reduction, no MXU.
    out = jnp.sum(h2 * w3t, axis=-1, keepdims=True) + b3        # (B, 1)

    # Lane-dense store: fill all 128 lanes (unmasked vst); wrapper takes col 0.
    o_ref[...] = jnp.broadcast_to(out, o_ref.shape).astype(o_ref.dtype)


def pack_actor_params(params):
    """Pack (w1, b1, w2, b2, w3, b3) into one (16+H, H) f32 slab -> one DMA."""
    w1, b1, w2, b2, w3, b3 = params
    H = w2.shape[0]
    slab = jnp.zeros((_HDR_ROWS + H, H), jnp.float32)
    slab = slab.at[0:3, :].set(w1.astype(jnp.float32))
    slab = slab.at[8, :].set(b1.reshape(H).astype(jnp.float32))
    slab = slab.at[9, :].set(b2.reshape(H).astype(jnp.float32))
    slab = slab.at[10, :].set(w3.reshape(H).astype(jnp.float32))
    slab = slab.at[11, 0].set(b3.reshape(()).astype(jnp.float32))
    slab = slab.at[_HDR_ROWS:_HDR_ROWS + H, :].set(w2.astype(jnp.float32))
    return slab


def _actor_forward_impl(state_padded, packed, block_b):
    B_pad = state_padded.shape[0]
    return pl.pallas_call(
        actor_kernel,
        out_shape=jax.ShapeDtypeStruct((B_pad, 128), jnp.float32),
        grid=(B_pad // block_b,),
        in_specs=[
            pl.BlockSpec((block_b, 3), lambda i: (i, 0)),
            pl.BlockSpec(packed.shape, lambda i: (0, 0)),   # params resident
        ],
        out_specs=pl.BlockSpec((block_b, 128), lambda i: (i, 0)),
        compiler_params=pltpu.CompilerParams(
            dimension_semantics=("parallel",)),
    )(state_padded, packed)


# jit with block_b static so repeated calls at the same shape reuse one
# compiled executable (padding + pallas_call + final slice all fused).
_actor_forward_jit = jax.jit(_actor_forward_impl, static_argnums=(2,))


def actor_forward(state, packed):
    B = state.shape[0]

    # Pad batch to a sublane multiple; tile large batches over a parallel grid
    # axis so one pallas_call amortizes fixed launch/DMA overhead.  512-row
    # tiles keep per-step overhead negligible while staying far below VMEM.
    block_b = 512 if B >= 512 else -(-B // 8) * 8
    B_pad = -(-B // block_b) * block_b
    if B_pad != B:
        state = jnp.pad(state, ((0, B_pad - B), (0, 0)))

    out = _actor_forward_jit(state, packed, block_b)
    return out[:B, 0:1]


def init_actor_params(key, hidden_size):
    """Deterministic init mimicking PyTorch nn.Linear (uniform +-1/sqrt(fan_in))."""
    def linear(key, fan_in, fan_out):
        kw, kb = jax.random.split(key)
        bound = 1.0 / jnp.sqrt(fan_in)
        w = jax.random.uniform(kw, (fan_in, fan_out), jnp.float32, -bound, bound)
        b = jax.random.uniform(kb, (1, fan_out), jnp.float32, -bound, bound)
        return w, b

    k1, k2, k3 = jax.random.split(key, 3)
    w1, b1 = linear(k1, 3, hidden_size)
    w2, b2 = linear(k2, hidden_size, hidden_size)
    w3, b3 = linear(k3, hidden_size, 1)
    return (w1, b1, w2, b2, w3, b3)


def actor_reference(state, params):
    w1, b1, w2, b2, w3, b3 = params
    h1 = jnp.tanh(state @ w1 + b1)
    h2 = jnp.tanh(h1 @ w2 + b2)
    return h2 @ w3 + b3


if __name__ == "__main__":
    hidden_size = 32
    batch = 8

    key = jax.random.PRNGKey(0)
    k_params, k_state = jax.random.split(key)

    params = init_actor_params(k_params, hidden_size)
    packed = pack_actor_params(params)

    # stochastic=True: parameter unused in forward, kept for module parity.
    policy_log_std = jnp.zeros((1, 1), jnp.float32)  # noqa: F841

    state = jax.random.normal(k_state, (batch, 3), jnp.float32)

    out = jax.block_until_ready(actor_forward(state, packed))
    ref = actor_reference(state, params)

    assert out.shape == (batch, 1)
    assert jnp.allclose(out, ref, atol=1e-5, rtol=1e-5)

    print("KERNEL_OK")
</pallas_src>

<mosaic_0001>
module attributes {stable_mosaic.version = 11 : i64} {
  func.func @actor_kernel(%arg0: i32, %arg1: memref<8x3xf32, #tpu.memory_space<vmem>>, %arg2: memref<48x32xf32, #tpu.memory_space<vmem>>, %arg3: memref<8x128xf32, #tpu.memory_space<vmem>>) attributes {dimension_semantics = [#tpu.dimension_semantics<parallel>], iteration_bounds = array<i64: 1>, scalar_prefetch = 0 : i64, scratch_operands = 0 : i64, tpu.core_type = #tpu.core_type<tc>, window_params = [{transform_indices = @transform_0, window_bounds = array<i64: 8, 3>}, {pipeline_mode = #tpu.pipeline_mode<synchronous>, transform_indices = @transform_1, window_bounds = array<i64: 48, 32>}, {transform_indices = @transform_2, window_bounds = array<i64: 8, 128>}]} {
    %c0 = arith.constant 0 : index
    %c0_0 = arith.constant 0 : index
    %0 = vector.load %arg1[%c0, %c0_0] : memref<8x3xf32, #tpu.memory_space<vmem>>, vector<8x3xf32>
    %c0_1 = arith.constant 0 : index
    %c0_2 = arith.constant 0 : index
    %1 = vector.load %arg2[%c0_1, %c0_2] : memref<48x32xf32, #tpu.memory_space<vmem>>, vector<16x32xf32>
    %2 = vector.extract_strided_slice %1 {offsets = [0, 0], sizes = [1, 32], strides = [1, 1]} : vector<16x32xf32> to vector<1x32xf32>
    %3 = vector.extract_strided_slice %1 {offsets = [1, 0], sizes = [1, 32], strides = [1, 1]} : vector<16x32xf32> to vector<1x32xf32>
    %4 = vector.extract_strided_slice %1 {offsets = [2, 0], sizes = [1, 32], strides = [1, 1]} : vector<16x32xf32> to vector<1x32xf32>
    %5 = vector.extract_strided_slice %1 {offsets = [8, 0], sizes = [1, 32], strides = [1, 1]} : vector<16x32xf32> to vector<1x32xf32>
    %6 = vector.extract_strided_slice %1 {offsets = [9, 0], sizes = [1, 32], strides = [1, 1]} : vector<16x32xf32> to vector<1x32xf32>
    %7 = vector.extract_strided_slice %1 {offsets = [10, 0], sizes = [1, 32], strides = [1, 1]} : vector<16x32xf32> to vector<1x32xf32>
    %8 = vector.extract_strided_slice %1 {offsets = [11, 0], sizes = [1, 1], strides = [1, 1]} : vector<16x32xf32> to vector<1x1xf32>
    %c16 = arith.constant 16 : index
    %c0_3 = arith.constant 0 : index
    %9 = vector.load %arg2[%c16, %c0_3] : memref<48x32xf32, #tpu.memory_space<vmem>>, vector<32x32xf32>
    %10 = vector.extract_strided_slice %0 {offsets = [0, 0], sizes = [8, 1], strides = [1, 1]} : vector<8x3xf32> to vector<8x1xf32>
    %11 = vector.broadcast %10 : vector<8x1xf32> to vector<8x32xf32>
    %12 = vector.broadcast %2 : vector<1x32xf32> to vector<8x32xf32>
    %13 = arith.mulf %11, %12 : vector<8x32xf32>
    %14 = vector.extract_strided_slice %0 {offsets = [0, 1], sizes = [8, 1], strides = [1, 1]} : vector<8x3xf32> to vector<8x1xf32>
    %15 = vector.broadcast %14 : vector<8x1xf32> to vector<8x32xf32>
    %16 = vector.broadcast %3 : vector<1x32xf32> to vector<8x32xf32>
    %17 = arith.mulf %15, %16 : vector<8x32xf32>
    %18 = arith.addf %13, %17 : vector<8x32xf32>
    %19 = vector.extract_strided_slice %0 {offsets = [0, 2], sizes = [8, 1], strides = [1, 1]} : vector<8x3xf32> to vector<8x1xf32>
    %20 = vector.broadcast %19 : vector<8x1xf32> to vector<8x32xf32>
    %21 = vector.broadcast %4 : vector<1x32xf32> to vector<8x32xf32>
    %22 = arith.mulf %20, %21 : vector<8x32xf32>
    %23 = arith.addf %18, %22 : vector<8x32xf32>
    %24 = vector.broadcast %5 : vector<1x32xf32> to vector<8x32xf32>
    %25 = arith.addf %23, %24 : vector<8x32xf32>
    %26 = math.tanh %25 : vector<8x32xf32>
    %cst = arith.constant dense<0.000000e+00> : vector<8x32xf32>
    %27 = tpu.matmul %26, %9, %cst {dimension_numbers = #tpu.dot_dimension_numbers<[1], [0], [0], [1], [0, 0, 1, 1], [], []>} : vector<8x32xf32>, vector<32x32xf32>, vector<8x32xf32> -> vector<8x32xf32>
    %28 = vector.broadcast %6 : vector<1x32xf32> to vector<8x32xf32>
    %29 = arith.addf %27, %28 : vector<8x32xf32>
    %30 = math.tanh %29 : vector<8x32xf32>
    %31 = vector.broadcast %7 : vector<1x32xf32> to vector<8x32xf32>
    %32 = arith.mulf %30, %31 : vector<8x32xf32>
    %cst_4 = arith.constant dense<0.000000e+00> : vector<8xf32>
    %33 = vector.multi_reduction <add>, %32, %cst_4 [1] : vector<8x32xf32> to vector<8xf32>
    %34 = vector.shape_cast %33 : vector<8xf32> to vector<8x1xf32>
    %35 = vector.broadcast %8 : vector<1x1xf32> to vector<8x1xf32>
    %36 = arith.addf %34, %35 : vector<8x1xf32>
    %37 = vector.shape_cast %36 : vector<8x1xf32> to vector<8x1xf32>
    %38 = vector.broadcast %37 : vector<8x1xf32> to vector<8x128xf32>
    %c0_5 = arith.constant 0 : index
    %c0_6 = arith.constant 0 : index
    %39 = vector.load %arg3[%c0_5, %c0_6] : memref<8x128xf32, #tpu.memory_space<vmem>>, vector<8x128xf32>
    tpu.vector_store %arg3[%c0_5, %c0_6], %38 {strides = array<i32>} : memref<8x128xf32, #tpu.memory_space<vmem>>, vector<8x128xf32>,
    return
  }
  func.func @transform_0(%arg0: i32) -> (i32, i32) {
    %c0_i32 = arith.constant 0 : i32
    %c0_i32_0 = arith.constant 0 : i32
    return %arg0, %c0_i32 : i32, i32
  }
  func.func @transform_1(%arg0: i32) -> (i32, i32) {
    %c0_i32 = arith.constant 0 : i32
    %c0_i32_0 = arith.constant 0 : i32
    %c0_i32_1 = arith.constant 0 : i32
    return %c0_i32, %c0_i32_0 : i32, i32
  }
  func.func @transform_2(%arg0: i32) -> (i32, i32) {
    %c0_i32 = arith.constant 0 : i32
    %c0_i32_0 = arith.constant 0 : i32
    return %arg0, %c0_i32 : i32, i32
  }
}

</mosaic_0001>

<bundles_post_ra>
// kernel: _actor_forward_impl.1
= control target key start
LH: loop header
LB: loop body
LE: loop exit
PB: predicated region body
PF: predicated region fallthrough
CT: control target
= control target key end

     0   :  { %v229_v1 = vmov 0   ;;  %v230_v2 = vmov 2   ;;  %s284_s0 = inlined_call_operand.vmem [shape: f32[8,3], index: 0, kind: input, shape index: {}]   ;;  %s285_s1 = inlined_call_operand.vmem [shape: f32[48,32], index: 1, kind: input, shape index: {}]   ;;  %s286_s2 = inlined_call_operand.hbm [shape: f32[8,128], index: 2, kind: output, shape index: {}]  }
   0x1   :  { %v12_v0 = vld [vmem:[%s284_s0] sm:$0xff]  ;;  %197 = vset.pattern.permute.xlu0 %v229_v1  ;;  %199 = vset.pattern.permute.xlu1 %v230_v2 }
   0x2   :  { %7 = vsyncpa [#allocation3], 0  ;;  %21 = vperm.xlu0 %197, %v12_v0   ;;  %40 = vperm.xlu1 %199, %v12_v0   ;;  %v231_v3 = vmov 1   ;;  %v15_v4 = vld [vmem:[%s285_s1 + $0x10] sm:$0xff]  ;;  %v16_v5 = vld [vmem:[%s285_s1 + $0x18] sm:$0xff]  ;;  %v232_v7 = vmov 0.0|0.0   ;;  %v24_v12 = vlaneseq }
   0x3   :  { %v17_v6 = vld [vmem:[%s285_s1 + $0x20] sm:$0xff]  ;;  %184 = vmatprep.subr.bf16.mxu0 %v232_v7  ;;  %v185_v8 = vpack.c.bf16 %v16_v5, %v15_v4  ;;  %v18_v9 = vld [vmem:[%s285_s1 + $0x28] sm:$0xff]  ;;  %vm233_vm0 = vmmov 0   ;;  %v234_v10 = vmov 0.0   ;;  %vm59_vm1 = vcmask 261120  }
   0x4   :  { %181 = vmatprep.mubr.msk.f32.mxu0 %vm233_vm0, %v234_v10  ;;  %v188_v11 = vpack.c.bf16 %v18_v9, %v17_v6  ;;  %v25_v13 = vshrl.u32 %v24_v12, 7  ;;  %v13_v17 = vld [vmem:[%s285_s1] sm:$0xff]  ;;  %v14_v24 = vld [vmem:[%s285_s1 + $0x8] sm:$0xff]  ;;  %s235_s1 = smov [#allocation2]  }
   0x5   :  { %186 = vmatpush3.bf16.msra.mxu0 %v185_v8  ;;  %s159_s22 = sshll.u32 %s235_s1, 4  ;;  %s160_s22 = int_to_ptr.vmem [resolvable:$true] %s159_s22 }
   0x6   :  { %198 = vset.pattern.permute.xlu0 %v231_v3  ;;  %187 = vmatprep.subr.bf16.mxu0 %v232_v7  ;;  %v26_v14 = vsub.s32 0, %v25_v13  ;;  %v35_v15 = vsub.s32 1, %v25_v13  ;;  %v45_v16 = vsub.s32 2, %v25_v13  ;;  %v144_v41 = vsub.s32 3, %v25_v13  ;;  %s205_s23 = scalar_lea.vmem %s160_s22, 128  ;;  %p210_p1 = scmp.lt.s32.totalorder %s160_s22, %s160_s22 }
   0x7   :  { %30 = vperm.xlu0 %198, %v12_v0   ;;  %p206_p0 = scmp.ne.s32.totalorder %s160_s22, %s205_s23  ;;  %p211_p2 = scmp.lt.s32.totalorder %s205_s23, %s205_s23 }
   0x8   :  { %v27_v19 = vrot.slane %v13_v17, %v26_v14  ;;  %v36_v20 = vrot.slane %v13_v17, %v35_v15  ;;  %v46_v21 = vrot.slane %v13_v17, %v45_v16  ;;  %v52_v29 = vrot.slane %v14_v24, %v26_v14 }
   0x9   :  { %189 = vmatpush3.bf16.msra.mxu0 %v188_v11  ;;  %v58_v33 = vrot.slane %v14_v24, %v35_v15  ;;  %v137_v37 = vrot.slane %v14_v24, %v45_v16  ;;  %v145_v42 = vrot.slane %v14_v24, %v144_v41  ;;  %p212_p3 = por %p211_p2, %p210_p1 }
   0xb   :  { %200 = vset.pattern.permute.xlu0 %v229_v1  ;;  %p213_p4 = pnand %p212_p3, %p206_p0 }
  0x81   :  { %v22_v18 = vpop.permute.xlu0 %21  ;;  %v41_v22 = vpop.permute.xlu1 %40 }
  0x82   :  { %v28_v25 = vmul.f32 %v27_v19, %v22_v18  ;;  %v47_v27 = vmul.f32 %v46_v21, %v41_v22 }
  0x86   :  { %v31_v23 = vpop.permute.xlu0 %30 }
  0x87   :  { %v37_v26 = vmul.f32 %v36_v20, %v31_v23 }
  0x89   :  { %v38_v28 = vadd.f32 %v37_v26, %v28_v25 }
  0x8b   :  { %v48_v30 = vadd.f32 %v47_v27, %v38_v28 }
  0x8d   :  { %v53_v31 = vadd.f32 %v52_v29, %v48_v30 }
  0x8f   :  { %201 = vtanh.f32 %v53_v31 }
  0x99   :  { %v202_v32 = vpop.eup %201 }
  0x9a   :  { %182 = vmatmul.mubr.msk.f32.vlgmr.msra.gmra.mrb[0].mxu0 %vm59_vm1, %v202_v32 }
 0x16d   :  { %v129_v34 = vpop.f32.mrb[0].mxu0 }
 0x16e   :  { %v130_v35 = vadd.f32 %v129_v34, %v58_v33  ;;  %v183_v36 = vpop.f32.mrb[1].mxu0 }
 0x170   :  { %203 = vtanh.f32 %v130_v35 }
 0x17a   :  { %v204_v38 = vpop.eup %203 }
 0x17b   :  { %v138_v39 = vmul.f32 %v204_v38, %v137_v37 }
 0x17d   :  { %v139_v40 = vsel %vm59_vm1, %v138_v39, 0.0 }
 0x17e   :  { %140 = vadd.xlane.f32.xlu1 %v139_v40 }
 0x20b   :  { %v141_v43 = vpop.xlane.xlu1 %140 }
 0x20c   :  { %v146_v44 = vadd.f32 %v145_v42, %v141_v43 }
 0x20e   :  { %149 = vperm.xlu0 %200, %v146_v44  }
 0x28d   :  { %v150_v45 = vpop.permute.xlu0 %149 }
 0x28e   :  { %152 = vst [vmem:[#allocation2] sm:$0xff] %v150_v45 }
 0x28f   :  { %216 = shalt.err (!%p213_p4)
}
 0x290   :  { %s217_s26 = scalar_lea.hbm %s286_s2, 128 }
 0x291   :  { %p218_p5 = scmp.ne.s32.totalorder %s286_s2, %s217_s26  ;;  %p221_p6 = scmp.lt.u32.totalorder %s217_s26, %s286_s2 }
 0x293   :  { %p223_p7 = pnand %p221_p6, %p218_p5 }
 0x295   :  { %226 = shalt.err (!%p223_p7)
}
 0x296   :  { %162 = dma.vmem_to_hbm [thread:$0]  %s160_s22, 128, %s286_s2, [#allocation3]  }
 0x297   :  { %227 = dma.done.wait [#allocation3], 128  }
 0x298   :  { %228 = vsyncadd [#allocation3], 4294967168 }
 0x299   :  { %166 = vsyncpa [#allocation3], 1 }

</bundles_post_ra>
